<compile_context>
chip_gen: v7x
topology: tpu7x:2x2x1
jax: 0.10.0
libtpu: 0.0.40
codegen_flags: <defaults>
</compile_context>

<pallas_src>
import functools

import jax
import jax.numpy as jnp
from jax.experimental import pallas as pl
from jax.experimental.pallas import tpu as pltpu


def _sogclr_kernel(gamma_ref, h1r_ref, h2r_ref, h1c_ref, h2c_ref, u_ref,
                   u_new_ref, loss_ref,
                   s_neg1, s_neg2, s_w1, s_w2,
                   *, T, inv_denom, tile_i, tile_j):
    i = pl.program_id(0)
    j = pl.program_id(1)
    nj = pl.num_programs(1)

    @pl.when(j == 0)
    def _():
        s_neg1[...] = jnp.zeros_like(s_neg1)
        s_neg2[...] = jnp.zeros_like(s_neg2)
        s_w1[...] = jnp.zeros_like(s_w1)
        s_w2[...] = jnp.zeros_like(s_w2)

    dn = (((1,), (1,)), ((), ()))   # contract feature dims (no explicit .T)

    def accumulate(not_diag):
        """Gram tiles -> exp -> (optional mask) -> row-reduce -> accumulate."""
        def pair(row, col_a_ref, col_b_ref, s_neg, s_w):
            # Process one (ab/ba, aa/bb) pair end-to-end to bound live tiles.
            l_a = jax.lax.dot_general(row, col_a_ref[...], dn,
                                      preferred_element_type=jnp.float32)
            e_a = jnp.exp(l_a)                      # rows pre-scaled by 1/T -> exp(l/T)
            l_b = jax.lax.dot_general(row, col_b_ref[...], dn,
                                      preferred_element_type=jnp.float32)
            e_b = jnp.exp(l_b)
            neg = e_a + e_b                         # sum_k exp(l/T)
            w = e_a * l_a + e_b * l_b               # sum_k exp(l/T) * (l/T)
            if not_diag is not None:                # post-exp masking == -LARGE_NUM trick
                neg = neg * not_diag
                w = w * not_diag
            s_neg[...] += jnp.sum(neg, axis=1, keepdims=True)
            s_w[...] += jnp.sum(w, axis=1, keepdims=True)

        pair(h1r_ref[...], h2c_ref, h1c_ref, s_neg1, s_w1)   # logits_ab, logits_aa
        pair(h2r_ref[...], h1c_ref, h2c_ref, s_neg2, s_w2)   # logits_ba, logits_bb

    # Only tiles intersecting the global diagonal need the mask (scalar gate).
    row0 = i * tile_i
    col0 = j * tile_j
    has_diag = jnp.logical_and(col0 < row0 + tile_i, row0 < col0 + tile_j)

    @pl.when(has_diag)
    def _():
        off = col0 - row0
        r = jax.lax.broadcasted_iota(jnp.int32, (tile_i, tile_j), 0)
        c = jax.lax.broadcasted_iota(jnp.int32, (tile_i, tile_j), 1)
        accumulate((c - r != off).astype(jnp.float32))

    @pl.when(jnp.logical_not(has_diag))
    def _():
        accumulate(None)

    @pl.when(j == nj - 1)
    def _():
        gamma = gamma_ref[0, 0]                     # effective gamma (u==0 branch folded in)
        u_in = u_ref[...]                           # (tile_i, 1) f32
        u1 = (1.0 - gamma) * u_in + gamma * (s_neg1[...] * inv_denom)
        u2 = (1.0 - gamma) * u_in + gamma * (s_neg2[...] * inv_denom)
        u_new_ref[...] = (0.5 * (u1 + u2)).astype(u_new_ref.dtype)

        # s_w holds sum(exp(l/T) * l/T); * T recovers sum(exp(l/T) * l).
        scale = T * inv_denom
        expsum1 = s_w1[...] * scale / u1            # (tile_i, 1) divides only
        expsum2 = s_w2[...] * scale / u2
        # loss_a + loss_b = (expsum1 - diag) + (expsum2 - diag); the 2*diag
        # positive term is subtracted in the wrapper (f32 normalized features).
        loss_ref[...] = (expsum1 + expsum2).astype(loss_ref.dtype)


def _tpu_vmem_budget_bytes():
    """Per-generation scoped-VMEM budget (96 MiB-ish on v5e/v6e, ~40 MiB on v7x)."""
    cap = None
    try:
        info = pltpu.get_tpu_info()
        cap = getattr(info, "vmem_capacity_bytes", None)
    except Exception:
        cap = None
    if not cap:
        cap = 64 * 1024 * 1024                      # assume v7x-sized VMEM if unknown
    if cap >= 96 * 1024 * 1024:                     # v5e / v6e: 128 MiB physical
        return int(cap * 3 // 4)
    return 40 * 1024 * 1024                         # v7x: 64 MiB physical -> headroom


def _footprint_bytes(t_i, t_j, d):
    inputs = 2 * (2 * t_i * d * 2 + 2 * t_j * d * 2 + t_i * 4)   # double-buffered bf16 rows/cols + f32 u
    outputs = 2 * (2 * t_i * 4)
    scratch = 4 * t_i * 4
    temps = 10 * t_i * t_j * 4                                    # live logits/exp/mask f32 tiles
    return int(1.25 * (inputs + outputs + scratch + temps))


def _vmem_limit_bytes(t_i, t_j, d):
    return max(min(_footprint_bytes(t_i, t_j, d), _tpu_vmem_budget_bytes()),
               16 * 1024 * 1024)


def _pick_tiles(b, d):
    """Asymmetric tiles: row tile as large as VMEM allows, col tile MXU/lane aligned."""
    budget = _tpu_vmem_budget_bytes()

    def divisors(max_tile, step):
        return [t for t in range(step, min(max_tile, b) + 1, step) if b % t == 0]

    # Column (reduction-side) tile: prefer multiples of 128, capped at 256.
    tj_opts = [t for t in (256, 128) if t <= b and b % t == 0]
    if not tj_opts:
        tj_opts = divisors(256, 16) or divisors(256, 8) or [b]
    t_j = max(tj_opts)

    # Row tile: biggest that fits the VMEM budget; prefer n_i >= 2 so the
    # "parallel" row axis can use both v7x TensorCores.
    # TODO(synk): batch sizes with no 8/16-aligned divisor fall back to a single
    # full block; pad B upstream for such shapes.
    ti_opts = divisors(512, 16) or divisors(512, 8) or [b]
    ti_opts = sorted(set(ti_opts), reverse=True)
    pref = [t for t in ti_opts if b // t >= 2] or ti_opts
    t_i = pref[-1]
    for t in pref:
        if _footprint_bytes(t, t_j, d) <= budget:
            t_i = t
            break
    return t_i, t_j


def sogclr_loss_pallas(h1, h2, u_slice, gamma, T):
    """h1, h2: (B, D) raw embeddings; u_slice: (B, 1) = u[index]; returns (loss, u_new)."""
    B, D = h1.shape
    inv_t = 1.0 / float(T)

    # --- one-time prologue (jit-fused XLA ops, NOT repeated per grid step) ---
    def l2norm(h):
        # F.normalize(p=2, dim=1, eps=1e-12) == h * rsqrt(max(sum(h^2), 1e-24))
        h = h.astype(jnp.float32)
        ssq = jnp.sum(h * h, axis=1, keepdims=True)
        return h * jax.lax.rsqrt(jnp.maximum(ssq, 1e-24))

    h1n = l2norm(h1)
    h2n = l2norm(h2)
    diag = jnp.sum(h1n * h2n, axis=1, keepdims=True)        # (B, 1) f32 positives

    # Zero-pad feature dim to a multiple of 128 (does not change dot products).
    d_pad = max(128, ((D + 127) // 128) * 128)
    if d_pad != D:
        pad = ((0, 0), (0, d_pad - D))
        h1n = jnp.pad(h1n, pad)
        h2n = jnp.pad(h2n, pad)

    # bf16 once; row side carries the 1/T fold so the MXU emits logits/T.
    h1r = (h1n * inv_t).astype(jnp.bfloat16)
    h2r = (h2n * inv_t).astype(jnp.bfloat16)
    h1c = h1n.astype(jnp.bfloat16)
    h2c = h2n.astype(jnp.bfloat16)

    t_i, t_j = _pick_tiles(B, d_pad)
    n_i = B // t_i
    n_j = B // t_j

    # "if u[index].sum() == 0: gamma = 1" (exact equality, as in the reference).
    gamma_eff = jnp.where(jnp.sum(u_slice) == 0.0,
                          jnp.float32(1.0),
                          jnp.asarray(gamma, jnp.float32)).reshape(1, 1)

    inv_denom = 1.0 / (2.0 * max(B - 1, 1))                  # guard degenerate B == 1

    kernel = functools.partial(_sogclr_kernel, T=float(T), inv_denom=inv_denom,
                               tile_i=t_i, tile_j=t_j)

    grid_spec = pltpu.PrefetchScalarGridSpec(
        num_scalar_prefetch=0,
        grid=(n_i, n_j),
        in_specs=[
            pl.BlockSpec(memory_space=pltpu.MemorySpace.SMEM),    # gamma scalar
            pl.BlockSpec((t_i, d_pad), lambda i, j: (i, 0)),      # h1 rows (*1/T, bf16)
            pl.BlockSpec((t_i, d_pad), lambda i, j: (i, 0)),      # h2 rows (*1/T, bf16)
            pl.BlockSpec((t_j, d_pad), lambda i, j: (j, 0)),      # h1 cols (bf16)
            pl.BlockSpec((t_j, d_pad), lambda i, j: (j, 0)),      # h2 cols (bf16)
            pl.BlockSpec((t_i, 1), lambda i, j: (i, 0)),          # u[index] rows
        ],
        out_specs=(
            pl.BlockSpec((t_i, 1), lambda i, j: (i, 0)),          # u_new
            pl.BlockSpec((t_i, 1), lambda i, j: (i, 0)),          # per-row (expsum1+expsum2)
        ),
        scratch_shapes=[pltpu.VMEM((t_i, 1), jnp.float32)] * 4,
    )

    u_new, loss_rows = pl.pallas_call(
        kernel,
        grid_spec=grid_spec,
        out_shape=(jax.ShapeDtypeStruct((B, 1), jnp.float32),
                   jax.ShapeDtypeStruct((B, 1), jnp.float32)),
        compiler_params=pltpu.CompilerParams(
            dimension_semantics=("parallel", "arbitrary"),
            vmem_limit_bytes=_vmem_limit_bytes(t_i, t_j, d_pad),
        ),
    )(gamma_eff, h1r, h2r, h1c, h2c, u_slice)

    loss = jnp.mean(loss_rows - 2.0 * diag)                  # loss_a + loss_b, averaged
    return loss, u_new


@functools.partial(jax.jit, static_argnames=("T",))
def _sogclr_step(u, x, index, gamma, T):
    """Fused normalize + gather + kernel + scatter + mean (single dispatch)."""
    batch_size = x.shape[0] // 2
    h1 = x[:batch_size]
    h2 = x[batch_size:]
    u_slice = u[index]                                       # (B, 1) gather (plain-JAX glue)
    loss, u_new = sogclr_loss_pallas(h1, h2, u_slice, gamma, T)
    new_u = u.at[index].set(u_new)                           # stateful u update (glue)
    return loss, new_u


class SogCLRPallas:
    """JAX/Pallas port of the SogCLR module (forward pass + u-state update)."""

    def __init__(self, T=0.1, loss_type='dcl', N=50000):
        self.T = T
        self.N = N
        self.loss_type = loss_type
        self.u = jnp.zeros((N, 1), dtype=jnp.float32)        # deterministic init (zeros)

    def forward(self, x, index, gamma=0.9):
        loss, new_u = _sogclr_step(self.u, x, index,
                                   jnp.asarray(gamma, jnp.float32), self.T)
        self.u = new_u
        return loss

    __call__ = forward


if __name__ == "__main__":
    key = jax.random.PRNGKey(0)
    B, D = 8, 32                       # x holds 2*B samples of dim D
    kx, ki = jax.random.split(key)
    x = jax.random.normal(kx, (2 * B, D), dtype=jnp.float32)
    index = jax.random.permutation(ki, 50000)[:B].astype(jnp.int32)

    model = SogCLRPallas(T=0.1, loss_type='dcl', N=50000)
    loss = model(x, index, gamma=0.9)
    jax.block_until_ready(loss)

    # second call exercises the non-zero-u (gamma=0.9) moving-average branch
    loss2 = model(x, index, gamma=0.9)
    jax.block_until_ready(loss2)

    assert jnp.isfinite(loss) and jnp.isfinite(loss2)
    print("KERNEL_OK")
</pallas_src>

<mosaic_0001>
module attributes {stable_mosaic.version = 11 : i64} {
  func.func @_sogclr_kernel(%arg0: i32, %arg1: i32, %arg2: memref<1x1xf32, #tpu.memory_space<smem>>, %arg3: memref<8x128xbf16, #tpu.memory_space<vmem>>, %arg4: memref<8x128xbf16, #tpu.memory_space<vmem>>, %arg5: memref<8x128xbf16, #tpu.memory_space<vmem>>, %arg6: memref<8x128xbf16, #tpu.memory_space<vmem>>, %arg7: memref<8x1xf32, #tpu.memory_space<vmem>>, %arg8: memref<8x1xf32, #tpu.memory_space<vmem>>, %arg9: memref<8x1xf32, #tpu.memory_space<vmem>>, %arg10: memref<8x1xf32, #tpu.memory_space<vmem>>, %arg11: memref<8x1xf32, #tpu.memory_space<vmem>>, %arg12: memref<8x1xf32, #tpu.memory_space<vmem>>, %arg13: memref<8x1xf32, #tpu.memory_space<vmem>>) attributes {dimension_semantics = [#tpu.dimension_semantics<parallel>, #tpu.dimension_semantics<arbitrary>], iteration_bounds = array<i64: 1, 1>, scalar_prefetch = 0 : i64, scratch_operands = 4 : i64, tpu.core_type = #tpu.core_type<tc>, window_params = [{transform_indices = @transform_0, window_bounds = array<i64: 1, 1>}, {transform_indices = @transform_1, window_bounds = array<i64: 8, 128>}, {transform_indices = @transform_2, window_bounds = array<i64: 8, 128>}, {transform_indices = @transform_3, window_bounds = array<i64: 8, 128>}, {transform_indices = @transform_4, window_bounds = array<i64: 8, 128>}, {transform_indices = @transform_5, window_bounds = array<i64: 8, 1>}, {transform_indices = @transform_6, window_bounds = array<i64: 8, 1>}, {transform_indices = @transform_7, window_bounds = array<i64: 8, 1>}]} {
    %c0_i32 = arith.constant 0 : i32
    %0 = arith.cmpi eq, %arg1, %c0_i32 : i32
    %1 = arith.extui %0 : i1 to i32
    %c0_i32_0 = arith.constant 0 : i32
    %2 = arith.cmpi ne, %1, %c0_i32_0 : i32
    scf.if %2 {
      %cst = arith.constant 0.000000e+00 : f32
      %18 = vector.broadcast %cst : f32 to vector<8x1xf32>
      %c0 = arith.constant 0 : index
      %c0_8 = arith.constant 0 : index
      %19 = vector.load %arg10[%c0, %c0_8] : memref<8x1xf32, #tpu.memory_space<vmem>>, vector<8x1xf32>
      tpu.vector_store %arg10[%c0, %c0_8], %18 {strides = array<i32>} : memref<8x1xf32, #tpu.memory_space<vmem>>, vector<8x1xf32>,
      %cst_9 = arith.constant 0.000000e+00 : f32
      %20 = vector.broadcast %cst_9 : f32 to vector<8x1xf32>
      %c0_10 = arith.constant 0 : index
      %c0_11 = arith.constant 0 : index
      %21 = vector.load %arg11[%c0_10, %c0_11] : memref<8x1xf32, #tpu.memory_space<vmem>>, vector<8x1xf32>
      tpu.vector_store %arg11[%c0_10, %c0_11], %20 {strides = array<i32>} : memref<8x1xf32, #tpu.memory_space<vmem>>, vector<8x1xf32>,
      %cst_12 = arith.constant 0.000000e+00 : f32
      %22 = vector.broadcast %cst_12 : f32 to vector<8x1xf32>
      %c0_13 = arith.constant 0 : index
      %c0_14 = arith.constant 0 : index
      %23 = vector.load %arg12[%c0_13, %c0_14] : memref<8x1xf32, #tpu.memory_space<vmem>>, vector<8x1xf32>
      tpu.vector_store %arg12[%c0_13, %c0_14], %22 {strides = array<i32>} : memref<8x1xf32, #tpu.memory_space<vmem>>, vector<8x1xf32>,
      %cst_15 = arith.constant 0.000000e+00 : f32
      %24 = vector.broadcast %cst_15 : f32 to vector<8x1xf32>
      %c0_16 = arith.constant 0 : index
      %c0_17 = arith.constant 0 : index
      %25 = vector.load %arg13[%c0_16, %c0_17] : memref<8x1xf32, #tpu.memory_space<vmem>>, vector<8x1xf32>
      tpu.vector_store %arg13[%c0_16, %c0_17], %24 {strides = array<i32>} : memref<8x1xf32, #tpu.memory_space<vmem>>, vector<8x1xf32>,
    } else {
    }
    %c8_i32 = arith.constant 8 : i32
    %3 = arith.muli %arg0, %c8_i32 : i32
    %c8_i32_1 = arith.constant 8 : i32
    %4 = arith.muli %arg1, %c8_i32_1 : i32
    %c8_i32_2 = arith.constant 8 : i32
    %5 = arith.addi %3, %c8_i32_2 : i32
    %6 = arith.cmpi slt, %4, %5 : i32
    %c8_i32_3 = arith.constant 8 : i32
    %7 = arith.addi %4, %c8_i32_3 : i32
    %8 = arith.cmpi slt, %3, %7 : i32
    %9 = arith.andi %6, %8 : i1
    %10 = arith.extui %9 : i1 to i32
    %c0_i32_4 = arith.constant 0 : i32
    %11 = arith.cmpi ne, %10, %c0_i32_4 : i32
    scf.if %11 {
      %18 = arith.subi %4, %3 : i32
      %19 = tpu.iota {dimensions = array<i32: 0>} : vector<8x8xi32>
      %20 = tpu.iota {dimensions = array<i32: 1>} : vector<8x8xi32>
      %21 = arith.subi %20, %19 : vector<8x8xi32>
      %22 = vector.broadcast %18 : i32 to vector<8x8xi32>
      %23 = arith.cmpi ne, %21, %22 : vector<8x8xi32>
      %24 = arith.extui %23 : vector<8x8xi1> to vector<8x8xi32>
      %25 = arith.sitofp %24 : vector<8x8xi32> to vector<8x8xf32>
      %c0 = arith.constant 0 : index
      %c0_8 = arith.constant 0 : index
      %26 = vector.load %arg3[%c0, %c0_8] : memref<8x128xbf16, #tpu.memory_space<vmem>>, vector<8x128xbf16>
      %c0_9 = arith.constant 0 : index
      %c0_10 = arith.constant 0 : index
      %27 = vector.load %arg6[%c0_9, %c0_10] : memref<8x128xbf16, #tpu.memory_space<vmem>>, vector<8x128xbf16>
      %cst = arith.constant dense<0.000000e+00> : vector<8x8xf32>
      %28 = tpu.matmul %26, %27, %cst {dimension_numbers = #tpu.dot_dimension_numbers<[1], [1], [0], [0], [0, 0, 1, 0], [], []>} : vector<8x128xbf16>, vector<8x128xbf16>, vector<8x8xf32> -> vector<8x8xf32>
      %29 = math.exp %28 : vector<8x8xf32>
      %c0_11 = arith.constant 0 : index
      %c0_12 = arith.constant 0 : index
      %30 = vector.load %arg5[%c0_11, %c0_12] : memref<8x128xbf16, #tpu.memory_space<vmem>>, vector<8x128xbf16>
      %cst_13 = arith.constant dense<0.000000e+00> : vector<8x8xf32>
      %31 = tpu.matmul %26, %30, %cst_13 {dimension_numbers = #tpu.dot_dimension_numbers<[1], [1], [0], [0], [0, 0, 1, 0], [], []>} : vector<8x128xbf16>, vector<8x128xbf16>, vector<8x8xf32> -> vector<8x8xf32>
      %32 = math.exp %31 : vector<8x8xf32>
      %33 = arith.addf %29, %32 : vector<8x8xf32>
      %34 = arith.mulf %29, %28 : vector<8x8xf32>
      %35 = arith.mulf %32, %31 : vector<8x8xf32>
      %36 = arith.addf %34, %35 : vector<8x8xf32>
      %37 = arith.mulf %33, %25 : vector<8x8xf32>
      %38 = arith.mulf %36, %25 : vector<8x8xf32>
      %c0_14 = arith.constant 0 : index
      %c0_15 = arith.constant 0 : index
      %39 = vector.load %arg10[%c0_14, %c0_15] : memref<8x1xf32, #tpu.memory_space<vmem>>, vector<8x1xf32>
      %cst_16 = arith.constant dense<0.000000e+00> : vector<8xf32>
      %40 = vector.multi_reduction <add>, %37, %cst_16 [1] : vector<8x8xf32> to vector<8xf32>
      %41 = vector.shape_cast %40 : vector<8xf32> to vector<8x1xf32>
      %42 = arith.addf %39, %41 : vector<8x1xf32>
      %c0_17 = arith.constant 0 : index
      %c0_18 = arith.constant 0 : index
      %43 = vector.load %arg10[%c0_17, %c0_18] : memref<8x1xf32, #tpu.memory_space<vmem>>, vector<8x1xf32>
      tpu.vector_store %arg10[%c0_17, %c0_18], %42 {strides = array<i32>} : memref<8x1xf32, #tpu.memory_space<vmem>>, vector<8x1xf32>,
      %c0_19 = arith.constant 0 : index
      %c0_20 = arith.constant 0 : index
      %44 = vector.load %arg12[%c0_19, %c0_20] : memref<8x1xf32, #tpu.memory_space<vmem>>, vector<8x1xf32>
      %cst_21 = arith.constant dense<0.000000e+00> : vector<8xf32>
      %45 = vector.multi_reduction <add>, %38, %cst_21 [1] : vector<8x8xf32> to vector<8xf32>
      %46 = vector.shape_cast %45 : vector<8xf32> to vector<8x1xf32>
      %47 = arith.addf %44, %46 : vector<8x1xf32>
      %c0_22 = arith.constant 0 : index
      %c0_23 = arith.constant 0 : index
      %48 = vector.load %arg12[%c0_22, %c0_23] : memref<8x1xf32, #tpu.memory_space<vmem>>, vector<8x1xf32>
      tpu.vector_store %arg12[%c0_22, %c0_23], %47 {strides = array<i32>} : memref<8x1xf32, #tpu.memory_space<vmem>>, vector<8x1xf32>,
      %c0_24 = arith.constant 0 : index
      %c0_25 = arith.constant 0 : index
      %49 = vector.load %arg4[%c0_24, %c0_25] : memref<8x128xbf16, #tpu.memory_space<vmem>>, vector<8x128xbf16>
      %c0_26 = arith.constant 0 : index
      %c0_27 = arith.constant 0 : index
      %50 = vector.load %arg5[%c0_26, %c0_27] : memref<8x128xbf16, #tpu.memory_space<vmem>>, vector<8x128xbf16>
      %cst_28 = arith.constant dense<0.000000e+00> : vector<8x8xf32>
      %51 = tpu.matmul %49, %50, %cst_28 {dimension_numbers = #tpu.dot_dimension_numbers<[1], [1], [0], [0], [0, 0, 1, 0], [], []>} : vector<8x128xbf16>, vector<8x128xbf16>, vector<8x8xf32> -> vector<8x8xf32>
      %52 = math.exp %51 : vector<8x8xf32>
      %c0_29 = arith.constant 0 : index
      %c0_30 = arith.constant 0 : index
      %53 = vector.load %arg6[%c0_29, %c0_30] : memref<8x128xbf16, #tpu.memory_space<vmem>>, vector<8x128xbf16>
      %cst_31 = arith.constant dense<0.000000e+00> : vector<8x8xf32>
      %54 = tpu.matmul %49, %53, %cst_31 {dimension_numbers = #tpu.dot_dimension_numbers<[1], [1], [0], [0], [0, 0, 1, 0], [], []>} : vector<8x128xbf16>, vector<8x128xbf16>, vector<8x8xf32> -> vector<8x8xf32>
      %55 = math.exp %54 : vector<8x8xf32>
      %56 = arith.addf %52, %55 : vector<8x8xf32>
      %57 = arith.mulf %52, %51 : vector<8x8xf32>
      %58 = arith.mulf %55, %54 : vector<8x8xf32>
      %59 = arith.addf %57, %58 : vector<8x8xf32>
      %60 = arith.mulf %56, %25 : vector<8x8xf32>
      %61 = arith.mulf %59, %25 : vector<8x8xf32>
      %c0_32 = arith.constant 0 : index
      %c0_33 = arith.constant 0 : index
      %62 = vector.load %arg11[%c0_32, %c0_33] : memref<8x1xf32, #tpu.memory_space<vmem>>, vector<8x1xf32>
      %cst_34 = arith.constant dense<0.000000e+00> : vector<8xf32>
      %63 = vector.multi_reduction <add>, %60, %cst_34 [1] : vector<8x8xf32> to vector<8xf32>
      %64 = vector.shape_cast %63 : vector<8xf32> to vector<8x1xf32>
      %65 = arith.addf %62, %64 : vector<8x1xf32>
      %c0_35 = arith.constant 0 : index
      %c0_36 = arith.constant 0 : index
      %66 = vector.load %arg11[%c0_35, %c0_36] : memref<8x1xf32, #tpu.memory_space<vmem>>, vector<8x1xf32>
      tpu.vector_store %arg11[%c0_35, %c0_36], %65 {strides = array<i32>} : memref<8x1xf32, #tpu.memory_space<vmem>>, vector<8x1xf32>,
      %c0_37 = arith.constant 0 : index
      %c0_38 = arith.constant 0 : index
      %67 = vector.load %arg13[%c0_37, %c0_38] : memref<8x1xf32, #tpu.memory_space<vmem>>, vector<8x1xf32>
      %cst_39 = arith.constant dense<0.000000e+00> : vector<8xf32>
      %68 = vector.multi_reduction <add>, %61, %cst_39 [1] : vector<8x8xf32> to vector<8xf32>
      %69 = vector.shape_cast %68 : vector<8xf32> to vector<8x1xf32>
      %70 = arith.addf %67, %69 : vector<8x1xf32>
      %c0_40 = arith.constant 0 : index
      %c0_41 = arith.constant 0 : index
      %71 = vector.load %arg13[%c0_40, %c0_41] : memref<8x1xf32, #tpu.memory_space<vmem>>, vector<8x1xf32>
      tpu.vector_store %arg13[%c0_40, %c0_41], %70 {strides = array<i32>} : memref<8x1xf32, #tpu.memory_space<vmem>>, vector<8x1xf32>,
    } else {
    }
    %true = arith.constant true
    %12 = arith.xori %9, %true : i1
    %13 = arith.extui %12 : i1 to i32
    %c0_i32_5 = arith.constant 0 : i32
    %14 = arith.cmpi ne, %13, %c0_i32_5 : i32
    scf.if %14 {
      %c0 = arith.constant 0 : index
      %c0_8 = arith.constant 0 : index
      %18 = vector.load %arg3[%c0, %c0_8] : memref<8x128xbf16, #tpu.memory_space<vmem>>, vector<8x128xbf16>
      %c0_9 = arith.constant 0 : index
      %c0_10 = arith.constant 0 : index
      %19 = vector.load %arg6[%c0_9, %c0_10] : memref<8x128xbf16, #tpu.memory_space<vmem>>, vector<8x128xbf16>
      %cst = arith.constant dense<0.000000e+00> : vector<8x8xf32>
      %20 = tpu.matmul %18, %19, %cst {dimension_numbers = #tpu.dot_dimension_numbers<[1], [1], [0], [0], [0, 0, 1, 0], [], []>} : vector<8x128xbf16>, vector<8x128xbf16>, vector<8x8xf32> -> vector<8x8xf32>
      %21 = math.exp %20 : vector<8x8xf32>
      %c0_11 = arith.constant 0 : index
      %c0_12 = arith.constant 0 : index
      %22 = vector.load %arg5[%c0_11, %c0_12] : memref<8x128xbf16, #tpu.memory_space<vmem>>, vector<8x128xbf16>
      %cst_13 = arith.constant dense<0.000000e+00> : vector<8x8xf32>
      %23 = tpu.matmul %18, %22, %cst_13 {dimension_numbers = #tpu.dot_dimension_numbers<[1], [1], [0], [0], [0, 0, 1, 0], [], []>} : vector<8x128xbf16>, vector<8x128xbf16>, vector<8x8xf32> -> vector<8x8xf32>
      %24 = math.exp %23 : vector<8x8xf32>
      %25 = arith.addf %21, %24 : vector<8x8xf32>
      %26 = arith.mulf %21, %20 : vector<8x8xf32>
      %27 = arith.mulf %24, %23 : vector<8x8xf32>
      %28 = arith.addf %26, %27 : vector<8x8xf32>
      %c0_14 = arith.constant 0 : index
      %c0_15 = arith.constant 0 : index
      %29 = vector.load %arg10[%c0_14, %c0_15] : memref<8x1xf32, #tpu.memory_space<vmem>>, vector<8x1xf32>
      %cst_16 = arith.constant dense<0.000000e+00> : vector<8xf32>
      %30 = vector.multi_reduction <add>, %25, %cst_16 [1] : vector<8x8xf32> to vector<8xf32>
      %31 = vector.shape_cast %30 : vector<8xf32> to vector<8x1xf32>
      %32 = arith.addf %29, %31 : vector<8x1xf32>
      %c0_17 = arith.constant 0 : index
      %c0_18 = arith.constant 0 : index
      %33 = vector.load %arg10[%c0_17, %c0_18] : memref<8x1xf32, #tpu.memory_space<vmem>>, vector<8x1xf32>
      tpu.vector_store %arg10[%c0_17, %c0_18], %32 {strides = array<i32>} : memref<8x1xf32, #tpu.memory_space<vmem>>, vector<8x1xf32>,
      %c0_19 = arith.constant 0 : index
      %c0_20 = arith.constant 0 : index
      %34 = vector.load %arg12[%c0_19, %c0_20] : memref<8x1xf32, #tpu.memory_space<vmem>>, vector<8x1xf32>
      %cst_21 = arith.constant dense<0.000000e+00> : vector<8xf32>
      %35 = vector.multi_reduction <add>, %28, %cst_21 [1] : vector<8x8xf32> to vector<8xf32>
      %36 = vector.shape_cast %35 : vector<8xf32> to vector<8x1xf32>
      %37 = arith.addf %34, %36 : vector<8x1xf32>
      %c0_22 = arith.constant 0 : index
      %c0_23 = arith.constant 0 : index
      %38 = vector.load %arg12[%c0_22, %c0_23] : memref<8x1xf32, #tpu.memory_space<vmem>>, vector<8x1xf32>
      tpu.vector_store %arg12[%c0_22, %c0_23], %37 {strides = array<i32>} : memref<8x1xf32, #tpu.memory_space<vmem>>, vector<8x1xf32>,
      %c0_24 = arith.constant 0 : index
      %c0_25 = arith.constant 0 : index
      %39 = vector.load %arg4[%c0_24, %c0_25] : memref<8x128xbf16, #tpu.memory_space<vmem>>, vector<8x128xbf16>
      %c0_26 = arith.constant 0 : index
      %c0_27 = arith.constant 0 : index
      %40 = vector.load %arg5[%c0_26, %c0_27] : memref<8x128xbf16, #tpu.memory_space<vmem>>, vector<8x128xbf16>
      %cst_28 = arith.constant dense<0.000000e+00> : vector<8x8xf32>
      %41 = tpu.matmul %39, %40, %cst_28 {dimension_numbers = #tpu.dot_dimension_numbers<[1], [1], [0], [0], [0, 0, 1, 0], [], []>} : vector<8x128xbf16>, vector<8x128xbf16>, vector<8x8xf32> -> vector<8x8xf32>
      %42 = math.exp %41 : vector<8x8xf32>
      %c0_29 = arith.constant 0 : index
      %c0_30 = arith.constant 0 : index
      %43 = vector.load %arg6[%c0_29, %c0_30] : memref<8x128xbf16, #tpu.memory_space<vmem>>, vector<8x128xbf16>
      %cst_31 = arith.constant dense<0.000000e+00> : vector<8x8xf32>
      %44 = tpu.matmul %39, %43, %cst_31 {dimension_numbers = #tpu.dot_dimension_numbers<[1], [1], [0], [0], [0, 0, 1, 0], [], []>} : vector<8x128xbf16>, vector<8x128xbf16>, vector<8x8xf32> -> vector<8x8xf32>
      %45 = math.exp %44 : vector<8x8xf32>
      %46 = arith.addf %42, %45 : vector<8x8xf32>
      %47 = arith.mulf %42, %41 : vector<8x8xf32>
      %48 = arith.mulf %45, %44 : vector<8x8xf32>
      %49 = arith.addf %47, %48 : vector<8x8xf32>
      %c0_32 = arith.constant 0 : index
      %c0_33 = arith.constant 0 : index
      %50 = vector.load %arg11[%c0_32, %c0_33] : memref<8x1xf32, #tpu.memory_space<vmem>>, vector<8x1xf32>
      %cst_34 = arith.constant dense<0.000000e+00> : vector<8xf32>
      %51 = vector.multi_reduction <add>, %46, %cst_34 [1] : vector<8x8xf32> to vector<8xf32>
      %52 = vector.shape_cast %51 : vector<8xf32> to vector<8x1xf32>
      %53 = arith.addf %50, %52 : vector<8x1xf32>
      %c0_35 = arith.constant 0 : index
      %c0_36 = arith.constant 0 : index
      %54 = vector.load %arg11[%c0_35, %c0_36] : memref<8x1xf32, #tpu.memory_space<vmem>>, vector<8x1xf32>
      tpu.vector_store %arg11[%c0_35, %c0_36], %53 {strides = array<i32>} : memref<8x1xf32, #tpu.memory_space<vmem>>, vector<8x1xf32>,
      %c0_37 = arith.constant 0 : index
      %c0_38 = arith.constant 0 : index
      %55 = vector.load %arg13[%c0_37, %c0_38] : memref<8x1xf32, #tpu.memory_space<vmem>>, vector<8x1xf32>
      %cst_39 = arith.constant dense<0.000000e+00> : vector<8xf32>
      %56 = vector.multi_reduction <add>, %49, %cst_39 [1] : vector<8x8xf32> to vector<8xf32>
      %57 = vector.shape_cast %56 : vector<8xf32> to vector<8x1xf32>
      %58 = arith.addf %55, %57 : vector<8x1xf32>
      %c0_40 = arith.constant 0 : index
      %c0_41 = arith.constant 0 : index
      %59 = vector.load %arg13[%c0_40, %c0_41] : memref<8x1xf32, #tpu.memory_space<vmem>>, vector<8x1xf32>
      tpu.vector_store %arg13[%c0_40, %c0_41], %58 {strides = array<i32>} : memref<8x1xf32, #tpu.memory_space<vmem>>, vector<8x1xf32>,
    } else {
    }
    %c0_i32_6 = arith.constant 0 : i32
    %15 = arith.cmpi eq, %arg1, %c0_i32_6 : i32
    %16 = arith.extui %15 : i1 to i32
    %c0_i32_7 = arith.constant 0 : i32
    %17 = arith.cmpi ne, %16, %c0_i32_7 : i32
    scf.if %17 {
      %c0 = arith.constant 0 : index
      %c0_8 = arith.constant 0 : index
      %18 = memref.load %arg2[%c0, %c0_8] : memref<1x1xf32, #tpu.memory_space<smem>>
      %c0_9 = arith.constant 0 : index
      %c0_10 = arith.constant 0 : index
      %19 = vector.load %arg7[%c0_9, %c0_10] : memref<8x1xf32, #tpu.memory_space<vmem>>, vector<8x1xf32>
      %cst = arith.constant 1.000000e+00 : f32
      %20 = arith.subf %cst, %18 : f32
      %21 = vector.broadcast %20 : f32 to vector<8x1xf32>
      %22 = arith.mulf %21, %19 : vector<8x1xf32>
      %c0_11 = arith.constant 0 : index
      %c0_12 = arith.constant 0 : index
      %23 = vector.load %arg10[%c0_11, %c0_12] : memref<8x1xf32, #tpu.memory_space<vmem>>, vector<8x1xf32>
      %cst_13 = arith.constant 0.0714285746 : f32
      %24 = vector.broadcast %cst_13 : f32 to vector<8x1xf32>
      %25 = arith.mulf %23, %24 : vector<8x1xf32>
      %26 = vector.broadcast %18 : f32 to vector<8x1xf32>
      %27 = arith.mulf %26, %25 : vector<8x1xf32>
      %28 = arith.addf %22, %27 : vector<8x1xf32>
      %cst_14 = arith.constant 1.000000e+00 : f32
      %29 = arith.subf %cst_14, %18 : f32
      %30 = vector.broadcast %29 : f32 to vector<8x1xf32>
      %31 = arith.mulf %30, %19 : vector<8x1xf32>
      %c0_15 = arith.constant 0 : index
      %c0_16 = arith.constant 0 : index
      %32 = vector.load %arg11[%c0_15, %c0_16] : memref<8x1xf32, #tpu.memory_space<vmem>>, vector<8x1xf32>
      %cst_17 = arith.constant 0.0714285746 : f32
      %33 = vector.broadcast %cst_17 : f32 to vector<8x1xf32>
      %34 = arith.mulf %32, %33 : vector<8x1xf32>
      %35 = vector.broadcast %18 : f32 to vector<8x1xf32>
      %36 = arith.mulf %35, %34 : vector<8x1xf32>
      %37 = arith.addf %31, %36 : vector<8x1xf32>
      %38 = arith.addf %28, %37 : vector<8x1xf32>
      %cst_18 = arith.constant 5.000000e-01 : f32
      %39 = vector.broadcast %cst_18 : f32 to vector<8x1xf32>
      %40 = arith.mulf %39, %38 : vector<8x1xf32>
      %c0_19 = arith.constant 0 : index
      %c0_20 = arith.constant 0 : index
      %41 = vector.load %arg8[%c0_19, %c0_20] : memref<8x1xf32, #tpu.memory_space<vmem>>, vector<8x1xf32>
      tpu.vector_store %arg8[%c0_19, %c0_20], %40 {strides = array<i32>} : memref<8x1xf32, #tpu.memory_space<vmem>>, vector<8x1xf32>,
      %c0_21 = arith.constant 0 : index
      %c0_22 = arith.constant 0 : index
      %42 = vector.load %arg12[%c0_21, %c0_22] : memref<8x1xf32, #tpu.memory_space<vmem>>, vector<8x1xf32>
      %cst_23 = arith.constant 0.00714285718 : f32
      %43 = vector.broadcast %cst_23 : f32 to vector<8x1xf32>
      %44 = arith.mulf %42, %43 : vector<8x1xf32>
      %45 = arith.divf %44, %28 : vector<8x1xf32>
      %c0_24 = arith.constant 0 : index
      %c0_25 = arith.constant 0 : index
      %46 = vector.load %arg13[%c0_24, %c0_25] : memref<8x1xf32, #tpu.memory_space<vmem>>, vector<8x1xf32>
      %cst_26 = arith.constant 0.00714285718 : f32
      %47 = vector.broadcast %cst_26 : f32 to vector<8x1xf32>
      %48 = arith.mulf %46, %47 : vector<8x1xf32>
      %49 = arith.divf %48, %37 : vector<8x1xf32>
      %50 = arith.addf %45, %49 : vector<8x1xf32>
      %c0_27 = arith.constant 0 : index
      %c0_28 = arith.constant 0 : index
      %51 = vector.load %arg9[%c0_27, %c0_28] : memref<8x1xf32, #tpu.memory_space<vmem>>, vector<8x1xf32>
      tpu.vector_store %arg9[%c0_27, %c0_28], %50 {strides = array<i32>} : memref<8x1xf32, #tpu.memory_space<vmem>>, vector<8x1xf32>,
    } else {
    }
    return
  }
  func.func @transform_0(%arg0: i32, %arg1: i32) -> (i32, i32) {
    %c0_i32 = arith.constant 0 : i32
    %c0_i32_0 = arith.constant 0 : i32
    %c0_i32_1 = arith.constant 0 : i32
    return %c0_i32, %c0_i32_0 : i32, i32
  }
  func.func @transform_1(%arg0: i32, %arg1: i32) -> (i32, i32) {
    %c0_i32 = arith.constant 0 : i32
    %c0_i32_0 = arith.constant 0 : i32
    return %arg0, %c0_i32 : i32, i32
  }
  func.func @transform_2(%arg0: i32, %arg1: i32) -> (i32, i32) {
    %c0_i32 = arith.constant 0 : i32
    %c0_i32_0 = arith.constant 0 : i32
    return %arg0, %c0_i32 : i32, i32
  }
  func.func @transform_3(%arg0: i32, %arg1: i32) -> (i32, i32) {
    %c0_i32 = arith.constant 0 : i32
    %c0_i32_0 = arith.constant 0 : i32
    return %arg1, %c0_i32 : i32, i32
  }
  func.func @transform_4(%arg0: i32, %arg1: i32) -> (i32, i32) {
    %c0_i32 = arith.constant 0 : i32
    %c0_i32_0 = arith.constant 0 : i32
    return %arg1, %c0_i32 : i32, i32
  }
  func.func @transform_5(%arg0: i32, %arg1: i32) -> (i32, i32) {
    %c0_i32 = arith.constant 0 : i32
    %c0_i32_0 = arith.constant 0 : i32
    return %arg0, %c0_i32 : i32, i32
  }
  func.func @transform_6(%arg0: i32, %arg1: i32) -> (i32, i32) {
    %c0_i32 = arith.constant 0 : i32
    %c0_i32_0 = arith.constant 0 : i32
    return %arg0, %c0_i32 : i32, i32
  }
  func.func @transform_7(%arg0: i32, %arg1: i32) -> (i32, i32) {
    %c0_i32 = arith.constant 0 : i32
    %c0_i32_0 = arith.constant 0 : i32
    return %arg0, %c0_i32 : i32, i32
  }
}

</mosaic_0001>

<bundles_post_ra>
// kernel: _sogclr_step.1
= control target key start
LH: loop header
LB: loop body
LE: loop exit
PB: predicated region body
PF: predicated region fallthrough
CT: control target
= control target key end

     0   :  { %v565_v0 = vmov 0.0   ;;  %vm566_vm0 = vmmov 0   ;;  %vm31_vm1 = vcmask 7168   ;;  %v47_v7 = vlaneseq  ;;  %s667_s4 = inlined_call_operand.vmem [shape: bf16[8,128], index: 4, kind: input, shape index: {}]   ;;  %s668_s3 = inlined_call_operand.vmem [shape: bf16[8,128], index: 3, kind: input, shape index: {}]   ;;  %s669_s1 = inlined_call_operand.vmem [shape: bf16[8,128], index: 1, kind: input, shape index: {}]   ;;  %s670_s2 = inlined_call_operand.vmem [shape: bf16[8,128], index: 2, kind: input, shape index: {}]   ;;  %s671_s0 = inlined_call_operand.<no memory space> [shape: f32[1,1], index: 0, kind: input, shape index: {}]   ;;  %s672_s5 = inlined_call_operand.vmem [shape: f32[8,1], index: 5, kind: input, shape index: {}]   ;;  %s673_s6 = inlined_call_operand.vmem [shape: f32[8,1], index: 6, kind: output, shape index: {0}]   ;;  %s674_s7 = inlined_call_operand.vmem [shape: f32[8,1], index: 7, kind: output, shape index: {1}]  }
   0x1   :  { %527 = vmatprep.subr.bf16.mxu0 %v565_v0  ;;  %533 = vmatprep.subr.bf16.mxu1 %v565_v0  ;;  %v57_v1 = vld [vmem:[%s667_s4] sm:$0xf]  ;;  %32 = vst.msk [vmem:[#allocation2] sm:$0xff] %vm31_vm1, %v565_v0  ;;  %33 = vst.msk [vmem:[#allocation3] sm:$0xff] %vm31_vm1, %v565_v0  ;;  %vm150_vm3 = vcmask 64512  }
   0x2   :  { %v100_v2 = vld [vmem:[%s668_s3] sm:$0xf]  ;;  %528 = vmatpush3.bf16.xpose.msra.mxu0 %v57_v1  ;;  %529 = vmatprep.mubr.msk.bf16.mxu0 %vm566_vm0, %v565_v0  ;;  %34 = vst.msk [vmem:[#allocation4] sm:$0xff] %vm31_vm1, %v565_v0  ;;  %35 = vst.msk [vmem:[#allocation5] sm:$0xff] %vm31_vm1, %v565_v0  ;;  %v48_v18 = vshrl.u32 %v47_v7, 7  ;;  %v50_v19 = vand.u32 127, %v47_v7 }
   0x3   :  { %534 = vmatpush3.bf16.xpose.msra.mxu1 %v100_v2  ;;  %535 = vmatprep.mubr.msk.bf16.mxu1 %vm566_vm0, %v565_v0  ;;  %v56_v3 = vld [vmem:[%s669_s1] sm:$0xf] }
   0x4   :  { %539 = vmatprep.subr.bf16.mxu0 %v565_v0  ;;  %545 = vmatprep.subr.bf16.mxu1 %v565_v0  ;;  %v207_v4 = vld [vmem:[%s667_s4] sm:$0xf]  ;;  %v51_v20 = vsub.s32 %v50_v19, %v48_v18 }
   0x5   :  { %v164_v5 = vld [vmem:[%s668_s3] sm:$0xf]  ;;  %s484_s3 = ssub.f32 1.0, %s671_s0 }
   0x6   :  { %v163_v6 = vld [vmem:[%s670_s2] sm:$0xf]  ;;  %vm53_vm2 = vcmp.ne.s32.totalorder %v51_v20, 0 }
   0x7   :  { %v518_v34 = vsel %vm53_vm2, 1.0, %v565_v0  ;;  %v483_v2 = vld [vmem:[%s672_s5] sm:$0xff] }
   0x8   :  { %v149_v52 = vld [vmem:[#allocation2] sm:$0xff]  ;;  %v256_v58 = vld [vmem:[#allocation3] sm:$0xff] }
   0x9   :  { %530 = vmatmul.mubr.bf16.vlgmr.msra.gmra.mrb[0].mxu0 %v56_v3  ;;  %v157_v54 = vld [vmem:[#allocation4] sm:$0xff]  ;;  %v262_v60 = vld [vmem:[#allocation5] sm:$0xff] }
   0xa   :  { %536 = vmatmul.mubr.bf16.vlgmr.msra.gmra.mrb[0].mxu1 %v56_v3  ;;  %540 = vmatpush3.bf16.xpose.msra.mxu0 %v164_v5  ;;  %v485_v3 = vstv %s484_s3 }
   0xb   :  { %546 = vmatpush3.bf16.xpose.msra.mxu1 %v207_v4  ;;  %541 = vmatprep.mubr.msk.bf16.mxu0 %vm566_vm0, %v565_v0  ;;  %v489_v4 = vstv %s671_s0  ;;  %v486_v5 = vmul.f32 %v485_v3, %v483_v2 }
   0xc   :  { %547 = vmatprep.mubr.msk.bf16.mxu1 %vm566_vm0, %v565_v0 }
  0x11   :  { %542 = vmatmul.mubr.bf16.vlgmr.msra.gmra.mrb[4].mxu0 %v163_v6 }
  0x12   :  { %548 = vmatmul.mubr.bf16.vlgmr.msra.gmra.mrb[4].mxu1 %v163_v6 }
  0xdc   :  { %v92_v8 = vpop.f32.mrb[0].mxu0 }
  0xdd   :  { %v135_v9 = vpop.f32.mrb[0].mxu1  ;;  %v98_v10 = vmul.f32 1.442695, %v92_v8  ;;  %v531_v12 = vpop.f32.mrb[1].mxu0 }
  0xde   :  { %v141_v11 = vmul.f32 1.442695, %v135_v9  ;;  %v537_v13 = vpop.f32.mrb[1].mxu1  ;;  %v95_v14 = vpop.f32.mrb[2].mxu0 }
  0xdf   :  { %v138_v15 = vpop.f32.mrb[2].mxu1  ;;  %553 = vpow2.f32 %v98_v10  ;;  %v532_v16 = vpop.f32.mrb[3].mxu0 }
  0xe0   :  { %v538_v17 = vpop.f32.mrb[3].mxu1  ;;  %555 = vpow2.f32 %v141_v11 }
  0xe4   :  { %v199_v21 = vpop.f32.mrb[4].mxu0 }
  0xe5   :  { %v242_v22 = vpop.f32.mrb[4].mxu1  ;;  %v205_v23 = vmul.f32 1.442695, %v199_v21  ;;  %v543_v25 = vpop.f32.mrb[5].mxu0 }
  0xe6   :  { %v248_v24 = vmul.f32 1.442695, %v242_v22  ;;  %v549_v26 = vpop.f32.mrb[5].mxu1  ;;  %v202_v27 = vpop.f32.mrb[6].mxu0 }
  0xe7   :  { %v245_v28 = vpop.f32.mrb[6].mxu1  ;;  %557 = vpow2.f32 %v205_v23  ;;  %v544_v29 = vpop.f32.mrb[7].mxu0 }
  0xe8   :  { %v550_v30 = vpop.f32.mrb[7].mxu1  ;;  %559 = vpow2.f32 %v248_v24 }
  0xe9   :  { %v554_v31 = vpop.eup %553 }
  0xea   :  { %v556_v32 = vpop.eup %555  ;;  %v144_v33 = vmul.f32 %v554_v31, %v92_v8 }
  0xeb   :  { %v145_v35 = vmul.f32 %v556_v32, %v135_v9  ;;  %v143_v36 = vadd.f32 %v556_v32, %v554_v31 }
  0xed   :  { %v147_v37 = vmul.f32 %v518_v34, %v143_v36  ;;  %v146_v38 = vadd.f32 %v145_v35, %v144_v33 }
  0xef   :  { %v151_v39 = vsel %vm150_vm3, %v147_v37, 0.0  ;;  %v148_v40 = vmul.f32 %v518_v34, %v146_v38 }
  0xf0   :  { %152 = vadd.xlane.f32.xlu0 %v151_v39 }
  0xf1   :  { %v558_v41 = vpop.eup %557  ;;  %v158_v42 = vsel %vm150_vm3, %v148_v40, 0.0 }
  0xf2   :  { %v560_v43 = vpop.eup %559  ;;  %v251_v44 = vmul.f32 %v558_v41, %v199_v21  ;;  %159 = vadd.xlane.f32.xlu1 %v158_v42 }
  0xf3   :  { %v252_v45 = vmul.f32 %v560_v43, %v242_v22  ;;  %v250_v46 = vadd.f32 %v560_v43, %v558_v41 }
  0xf5   :  { %v253_v47 = vadd.f32 %v252_v45, %v251_v44  ;;  %v254_v48 = vmul.f32 %v518_v34, %v250_v46 }
  0xf7   :  { %v257_v49 = vsel %vm150_vm3, %v254_v48, 0.0  ;;  %v255_v50 = vmul.f32 %v518_v34, %v253_v47 }
  0xf8   :  { %258 = vadd.xlane.f32.xlu0 %v257_v49 }
  0xf9   :  { %v263_v51 = vsel %vm150_vm3, %v255_v50, 0.0 }
  0xfa   :  { %264 = vadd.xlane.f32.xlu1 %v263_v51 }
 0x17d   :  { %v153_v53 = vpop.xlane.xlu0 %152 }
 0x17e   :  { %v154_v55 = vadd.f32 %v153_v53, %v149_v52 }
 0x17f   :  { %v160_v56 = vpop.xlane.xlu1 %159 }
 0x180   :  { %156 = vst.msk [vmem:[#allocation2] sm:$0xff] %vm31_vm1, %v154_v55  ;;  %v161_v57 = vadd.f32 %v160_v56, %v157_v54 }
 0x182   :  { %162 = vst.msk [vmem:[#allocation4] sm:$0xff] %vm31_vm1, %v161_v57 }
 0x185   :  { %v259_v59 = vpop.xlane.xlu0 %258 }
 0x186   :  { %v260_v61 = vadd.f32 %v259_v59, %v256_v58 }
 0x187   :  { %v487_v62 = vld [vmem:[#allocation2] sm:$0xff]  ;;  %v265_v63 = vpop.xlane.xlu1 %264 }
 0x188   :  { %v488_v0 = vmul.f32 0.071428575, %v487_v62  ;;  %261 = vst.msk [vmem:[#allocation3] sm:$0xff] %vm31_vm1, %v260_v61  ;;  %v266_v1 = vadd.f32 %v265_v63, %v262_v60 }
 0x189   :  { %v500_v14 = vld [vmem:[#allocation4] sm:$0xff] }
 0x18a   :  { %267 = vst.msk [vmem:[#allocation5] sm:$0xff] %vm31_vm1, %v266_v1  ;;  %v490_v6 = vmul.f32 %v489_v4, %v488_v0  ;;  %v501_v17 = vmul.f32 0.007142857, %v500_v14 }
 0x18c   :  { %v491_v8 = vadd.f32 %v490_v6, %v486_v5 }
 0x18e   :  { %561 = vrcp.f32 %v491_v8 }
 0x18f   :  { %v492_v7 = vld [vmem:[#allocation3] sm:$0xff] }
 0x190   :  { %v493_v9 = vmul.f32 0.071428575, %v492_v7 }
 0x191   :  { %v504_v15 = vld [vmem:[#allocation5] sm:$0xff] }
 0x192   :  { %v494_v10 = vmul.f32 %v493_v9, %v489_v4  ;;  %v505_v18 = vmul.f32 0.007142857, %v504_v15 }
 0x194   :  { %v495_v11 = vadd.f32 %v494_v10, %v486_v5 }
 0x196   :  { %v496_v12 = vadd.f32 %v495_v11, %v491_v8  ;;  %563 = vrcp.f32 %v495_v11 }
 0x198   :  { %v497_v13 = vmul.f32 0.5, %v496_v12  ;;  %v562_v16 = vpop.eup %561 }
 0x199   :  { %v503_v20 = vmul.f32 %v562_v16, %v501_v17 }
 0x19a   :  { %499 = vst.msk [vmem:[%s673_s6] sm:$0xff] %vm31_vm1, %v497_v13 }
 0x1a0   :  { %v564_v19 = vpop.eup %563 }
 0x1a1   :  { %v507_v21 = vmul.f32 %v564_v19, %v505_v18 }
 0x1a3   :  { %v508_v22 = vadd.f32 %v507_v21, %v503_v20 }
 0x1a5   :  { %509 = vst.msk [vmem:[%s674_s7] sm:$0xff] %vm31_vm1, %v508_v22 }

</bundles_post_ra>
